<compile_context>
chip_gen: v6e
topology: v6e:2x2x1
jax: 0.10.0
libtpu: 0.0.40
codegen_flags: <defaults>
</compile_context>

<pallas_src>
import functools
import math

import jax
import jax.numpy as jnp
from jax.experimental import pallas as pl
from jax.experimental.pallas import tpu as pltpu

_SUBLANE = 8
_LANE = 128
# Default tile targets (f32 worst case ~4.5 MiB/step double-buffered — fits the
# default scoped VMEM on v5e/v6e/v7x with plenty of headroom).
_TM, _TN, _TK = 512, 256, 512


def _round_up(x, m):
    return ((x + m - 1) // m) * m


def _isz(dt):
    return jnp.dtype(dt).itemsize


def _reparam_kernel(mean_ref, rho_ref, eps_ref, emb_ref):
    # Written as log1p(exp(rho)) to match torch.log(1.0 + torch.exp(rho)) exactly
    # (the PyTorch module does NOT use the thresholded F.softplus form).
    std = jnp.log1p(jnp.exp(rho_ref[...].astype(jnp.float32)))
    emb = mean_ref[...].astype(jnp.float32) + std * eps_ref[...].astype(jnp.float32)
    emb_ref[...] = emb.astype(emb_ref.dtype)


def _matmul_kernel(x_ref, w_ref, o_ref, acc_ref):
    @pl.when(pl.program_id(2) == 0)
    def _init():
        acc_ref[...] = jnp.zeros_like(acc_ref)

    acc_ref[...] += jnp.dot(
        x_ref[...], w_ref[...], preferred_element_type=jnp.float32
    )

    @pl.when(pl.program_id(2) == pl.num_programs(2) - 1)
    def _done():
        o_ref[...] = acc_ref[...].astype(o_ref.dtype)


@functools.partial(jax.jit, static_argnames=("training",))
def variational_linear(data, mean, rho, eps=None, *, training=False):
    """data: (..., K); mean/rho/eps: (N, K) -> (..., N) = data @ embeddings.T."""
    assert data.ndim >= 2, "data should be at least 2 dimensional"
    N, K = mean.shape
    assert data.shape[-1] == K, "data feature dim must match mean"

    lead = data.shape[:-1]
    M = math.prod(lead)

    # bf16-native MXU on all generations; keep f32 operands when inputs are f32
    # to preserve the module's numerics exactly.
    compute_dtype = jnp.bfloat16 if data.dtype == jnp.bfloat16 else jnp.float32

    # Tile sizes: largest of the targets that the (aligned) problem needs.
    tm = min(_TM, _round_up(M, _SUBLANE))
    tn = min(_TN, _round_up(N, _LANE))
    tk = min(_TK, _round_up(K, _LANE))
    Mp = _round_up(M, tm)
    Np = _round_up(N, tn)
    Kp = _round_up(K, tk)

    # Activations: flatten leading dims, pad to tile multiples.
    x = data.reshape(M, K).astype(compute_dtype)
    if (Mp, Kp) != (M, K):
        x = jnp.pad(x, ((0, Mp - M), (0, Kp - K)))

    def _prep_weight(w):
        # Transpose ONCE in the wrapper to (K, N) so the kernel contracts on a
        # plain [tm,tk] x [tk,tn] dot (no in-kernel transpose), then pad.
        wt = w.T
        if (Kp, Np) != (K, N):
            wt = jnp.pad(wt, ((0, Kp - K), (0, Np - N)))
        return wt

    if training:
        if eps is None:
            # TODO(synk): optionally sample eps in-kernel with pltpu.prng_seed /
            # pltpu.prng_random_bits when a PRNG key is supplied; here we require
            # an explicit eps so results are deterministic and checkable.
            raise ValueError("training=True requires an explicit `eps` of shape (N, K)")
        mean_t = _prep_weight(mean)
        rho_t = _prep_weight(rho)
        eps_t = _prep_weight(eps)

        emb_t = pl.pallas_call(
            _reparam_kernel,
            out_shape=jax.ShapeDtypeStruct((Kp, Np), compute_dtype),
            grid=(Kp // tk, Np // tn),
            in_specs=[
                pl.BlockSpec((tk, tn), lambda i, j: (i, j)),
                pl.BlockSpec((tk, tn), lambda i, j: (i, j)),
                pl.BlockSpec((tk, tn), lambda i, j: (i, j)),
            ],
            out_specs=pl.BlockSpec((tk, tn), lambda i, j: (i, j)),
            compiler_params=pltpu.CompilerParams(
                dimension_semantics=("parallel", "parallel")
            ),
            cost_estimate=pl.CostEstimate(
                flops=2 * Kp * Np,
                transcendentals=2 * Kp * Np,
                bytes_accessed=Kp * Np * (3 * _isz(mean.dtype) + _isz(compute_dtype)),
            ),
        )(mean_t, rho_t, eps_t)
    else:
        # Eval fast path: embeddings == mean; no eps DMA, no softplus/EUP work.
        emb_t = _prep_weight(mean).astype(compute_dtype)

    out_p = pl.pallas_call(
        _matmul_kernel,
        out_shape=jax.ShapeDtypeStruct((Mp, Np), data.dtype),
        grid=(Mp // tm, Np // tn, Kp // tk),
        in_specs=[
            pl.BlockSpec((tm, tk), lambda i, j, k: (i, k)),
            pl.BlockSpec((tk, tn), lambda i, j, k: (k, j)),
        ],
        out_specs=pl.BlockSpec((tm, tn), lambda i, j, k: (i, j)),
        scratch_shapes=[pltpu.VMEM((tm, tn), jnp.float32)],
        compiler_params=pltpu.CompilerParams(
            dimension_semantics=("parallel", "parallel", "arbitrary")
        ),
        cost_estimate=pl.CostEstimate(
            flops=2 * Mp * Np * Kp,
            transcendentals=0,
            bytes_accessed=(Mp * Kp + Kp * Np) * _isz(compute_dtype)
            + Mp * Np * _isz(data.dtype),
        ),
    )(x, emb_t)

    out = out_p[:M, :N]
    return out.reshape(*lead, N)


if __name__ == "__main__":
    key = jax.random.PRNGKey(0)
    k_mean, k_rho, k_data, k_eps = jax.random.split(key, 4)

    batch, seq = 2, 8
    in_features, out_features = 32, 16

    # Deterministic synthetic parameters (module __init__ takes mean, rho tensors).
    mean = jax.random.normal(k_mean, (out_features, in_features), jnp.float32) * 0.1
    rho = jax.random.normal(k_rho, (out_features, in_features), jnp.float32) * 0.1 - 3.0
    data = jax.random.normal(k_data, (batch, seq, in_features), jnp.float32)
    eps = jax.random.normal(k_eps, (out_features, in_features), jnp.float32)

    # Eval mode: embeddings = mean (fast path — reparam kernel skipped entirely).
    out_eval = variational_linear(data, mean, rho, training=False)
    jax.block_until_ready(out_eval)
    ref_eval = data @ mean.T
    assert out_eval.shape == (batch, seq, out_features)
    assert jnp.allclose(out_eval, ref_eval, atol=1e-5, rtol=1e-5)

    # Training mode: embeddings = mean + log(1 + exp(rho)) * eps (eps supplied
    # explicitly so the result is deterministic and checkable).
    out_train = variational_linear(data, mean, rho, eps, training=True)
    jax.block_until_ready(out_train)
    emb_ref = mean + jnp.log1p(jnp.exp(rho)) * eps
    ref_train = data @ emb_ref.T
    assert out_train.shape == (batch, seq, out_features)
    assert jnp.allclose(out_train, ref_train, atol=1e-5, rtol=1e-5)

    print("KERNEL_OK")
</pallas_src>

<mosaic_0001>
module attributes {stable_mosaic.version = 11 : i64} {
  func.func @_matmul_kernel(%arg0: i32, %arg1: i32, %arg2: i32, %arg3: memref<16x128xf32, #tpu.memory_space<vmem>>, %arg4: memref<128x128xf32, #tpu.memory_space<vmem>>, %arg5: memref<16x128xf32, #tpu.memory_space<vmem>>, %arg6: memref<16x128xf32, #tpu.memory_space<vmem>>) attributes {dimension_semantics = [#tpu.dimension_semantics<parallel>, #tpu.dimension_semantics<parallel>, #tpu.dimension_semantics<arbitrary>], iteration_bounds = array<i64: 1, 1, 1>, scalar_prefetch = 0 : i64, scratch_operands = 1 : i64, tpu.core_type = #tpu.core_type<tc>, window_params = [{transform_indices = @transform_0, window_bounds = array<i64: 16, 128>}, {transform_indices = @transform_1, window_bounds = array<i64: 128, 128>}, {transform_indices = @transform_2, window_bounds = array<i64: 16, 128>}]} {
    %c0_i32 = arith.constant 0 : i32
    %0 = arith.cmpi eq, %arg2, %c0_i32 : i32
    %1 = arith.extui %0 : i1 to i32
    %c0_i32_0 = arith.constant 0 : i32
    %2 = arith.cmpi ne, %1, %c0_i32_0 : i32
    scf.if %2 {
      %cst_10 = arith.constant 0.000000e+00 : f32
      %12 = vector.broadcast %cst_10 : f32 to vector<16x128xf32>
      %c0_11 = arith.constant 0 : index
      %c0_12 = arith.constant 0 : index
      %13 = vector.load %arg6[%c0_11, %c0_12] : memref<16x128xf32, #tpu.memory_space<vmem>>, vector<16x128xf32>
      tpu.vector_store %arg6[%c0_11, %c0_12], %12 {strides = array<i32>} : memref<16x128xf32, #tpu.memory_space<vmem>>, vector<16x128xf32>,
    } else {
    }
    %c0 = arith.constant 0 : index
    %c0_1 = arith.constant 0 : index
    %3 = vector.load %arg6[%c0, %c0_1] : memref<16x128xf32, #tpu.memory_space<vmem>>, vector<16x128xf32>
    %c0_2 = arith.constant 0 : index
    %c0_3 = arith.constant 0 : index
    %4 = vector.load %arg3[%c0_2, %c0_3] : memref<16x128xf32, #tpu.memory_space<vmem>>, vector<16x128xf32>
    %c0_4 = arith.constant 0 : index
    %c0_5 = arith.constant 0 : index
    %5 = vector.load %arg4[%c0_4, %c0_5] : memref<128x128xf32, #tpu.memory_space<vmem>>, vector<128x128xf32>
    %cst = arith.constant dense<0.000000e+00> : vector<16x128xf32>
    %6 = tpu.matmul %4, %5, %cst {dimension_numbers = #tpu.dot_dimension_numbers<[1], [0], [0], [1], [0, 0, 1, 1], [], []>} : vector<16x128xf32>, vector<128x128xf32>, vector<16x128xf32> -> vector<16x128xf32>
    %7 = arith.addf %3, %6 : vector<16x128xf32>
    %c0_6 = arith.constant 0 : index
    %c0_7 = arith.constant 0 : index
    %8 = vector.load %arg6[%c0_6, %c0_7] : memref<16x128xf32, #tpu.memory_space<vmem>>, vector<16x128xf32>
    tpu.vector_store %arg6[%c0_6, %c0_7], %7 {strides = array<i32>} : memref<16x128xf32, #tpu.memory_space<vmem>>, vector<16x128xf32>,
    %c0_i32_8 = arith.constant 0 : i32
    %9 = arith.cmpi eq, %arg2, %c0_i32_8 : i32
    %10 = arith.extui %9 : i1 to i32
    %c0_i32_9 = arith.constant 0 : i32
    %11 = arith.cmpi ne, %10, %c0_i32_9 : i32
    scf.if %11 {
      %c0_10 = arith.constant 0 : index
      %c0_11 = arith.constant 0 : index
      %12 = vector.load %arg6[%c0_10, %c0_11] : memref<16x128xf32, #tpu.memory_space<vmem>>, vector<16x128xf32>
      %c0_12 = arith.constant 0 : index
      %c0_13 = arith.constant 0 : index
      %13 = vector.load %arg5[%c0_12, %c0_13] : memref<16x128xf32, #tpu.memory_space<vmem>>, vector<16x128xf32>
      tpu.vector_store %arg5[%c0_12, %c0_13], %12 {strides = array<i32>} : memref<16x128xf32, #tpu.memory_space<vmem>>, vector<16x128xf32>,
    } else {
    }
    return
  }
  func.func @transform_0(%arg0: i32, %arg1: i32, %arg2: i32) -> (i32, i32) {
    %c0_i32 = arith.constant 0 : i32
    return %arg0, %arg2 : i32, i32
  }
  func.func @transform_1(%arg0: i32, %arg1: i32, %arg2: i32) -> (i32, i32) {
    %c0_i32 = arith.constant 0 : i32
    return %arg2, %arg1 : i32, i32
  }
  func.func @transform_2(%arg0: i32, %arg1: i32, %arg2: i32) -> (i32, i32) {
    %c0_i32 = arith.constant 0 : i32
    return %arg0, %arg1 : i32, i32
  }
}

</mosaic_0001>

<bundles_post_ra>
// kernel: variational_linear.1
= control target key start
LH: loop header
LB: loop body
LE: loop exit
PB: predicated region body
PF: predicated region fallthrough
CT: control target
= control target key end

     0   :  { %s255_s1 = inlined_call_operand.vmem [shape: f32[128,128], index: 1, kind: input, shape index: {}]   ;;  %s256_s0 = inlined_call_operand.vmem [shape: f32[16,128], index: 0, kind: input, shape index: {}]   ;;  %s257_s2 = inlined_call_operand.vmem [shape: f32[16,128], index: 2, kind: output, shape index: {}]  }
   0x1   :  { %v36_v0 = vld [vmem:[%s255_s1 + $0x78] sm:$0xff]  ;;  %v35_v1 = vld [vmem:[%s255_s1 + $0x70] sm:$0xff]  ;;  %v34_v2 = vld [vmem:[%s255_s1 + $0x68] sm:$0xff] }
   0x2   :  { %145 = vmatprep.subr.mxu0 %v36_v0  ;;  %v33_v3 = vld [vmem:[%s255_s1 + $0x60] sm:$0xff]  ;;  %v32_v5 = vld [vmem:[%s255_s1 + $0x58] sm:$0xff]  ;;  %v31_v6 = vld [vmem:[%s255_s1 + $0x50] sm:$0xff] }
   0x3   :  { %146 = vmatpush3.msra.mxu0 %v36_v0  ;;  %v19_v4 = vld [vmem:[%s256_s0] sm:$0xff]  ;;  %v30_v7 = vld [vmem:[%s255_s1 + $0x48] sm:$0xff]  ;;  %v28_v9 = vld [vmem:[%s255_s1 + $0x38] sm:$0xff] }
   0x4   :  { %147 = vmatprep.subr.mxu0 %v35_v1  ;;  %177 = vmatprep.mubr.f32.mxu0 %v19_v4  ;;  %v29_v8 = vld [vmem:[%s255_s1 + $0x40] sm:$0xff]  ;;  %v27_v10 = vld [vmem:[%s255_s1 + $0x30] sm:$0xff]  ;;  %v26_v11 = vld [vmem:[%s255_s1 + $0x28] sm:$0xff] }
   0x5   :  { %148 = vmatpush3.msra.mxu0 %v35_v1  ;;  %v25_v12 = vld [vmem:[%s255_s1 + $0x20] sm:$0xff]  ;;  %v24_v13 = vld [vmem:[%s255_s1 + $0x18] sm:$0xff]  ;;  %v23_v14 = vld [vmem:[%s255_s1 + $0x10] sm:$0xff] }
   0x6   :  { %149 = vmatprep.subr.mxu0 %v34_v2  ;;  %v22_v15 = vld [vmem:[%s255_s1 + $0x8] sm:$0xff]  ;;  %v21_v16 = vld [vmem:[%s255_s1] sm:$0xff] }
   0x7   :  { %150 = vmatpush3.msra.mxu0 %v34_v2  ;;  %v20_v17 = vld [vmem:[%s256_s0 + $0x8] sm:$0xff] }
   0x8   :  { %151 = vmatprep.subr.mxu0 %v33_v3 }
   0x9   :  { %152 = vmatpush3.msra.mxu0 %v33_v3 }
   0xa   :  { %153 = vmatprep.subr.mxu0 %v32_v5 }
   0xb   :  { %154 = vmatpush3.msra.mxu0 %v32_v5 }
   0xc   :  { %155 = vmatprep.subr.mxu0 %v31_v6 }
   0xd   :  { %156 = vmatpush3.msra.mxu0 %v31_v6 }
   0xe   :  { %157 = vmatprep.subr.mxu0 %v30_v7 }
   0xf   :  { %158 = vmatpush3.msra.mxu0 %v30_v7 }
  0x10   :  { %159 = vmatprep.subr.mxu0 %v29_v8 }
  0x11   :  { %160 = vmatpush3.msra.mxu0 %v29_v8 }
  0x12   :  { %161 = vmatprep.subr.mxu0 %v28_v9 }
  0x13   :  { %162 = vmatpush3.msra.mxu0 %v28_v9 }
  0x14   :  { %163 = vmatprep.subr.mxu0 %v27_v10 }
  0x15   :  { %164 = vmatpush3.msra.mxu0 %v27_v10 }
  0x16   :  { %165 = vmatprep.subr.mxu0 %v26_v11 }
  0x17   :  { %166 = vmatpush3.msra.mxu0 %v26_v11 }
  0x18   :  { %167 = vmatprep.subr.mxu0 %v25_v12 }
  0x19   :  { %168 = vmatpush3.msra.mxu0 %v25_v12 }
  0x1a   :  { %169 = vmatprep.subr.mxu0 %v24_v13 }
  0x1b   :  { %170 = vmatpush3.msra.mxu0 %v24_v13 }
  0x1c   :  { %171 = vmatprep.subr.mxu0 %v23_v14 }
  0x1d   :  { %172 = vmatpush3.msra.mxu0 %v23_v14 }
  0x1e   :  { %173 = vmatprep.subr.mxu0 %v22_v15 }
  0x1f   :  { %174 = vmatpush3.msra.mxu0 %v22_v15 }
  0x20   :  { %175 = vmatprep.subr.mxu0 %v21_v16 }
  0x21   :  { %176 = vmatpush3.msra.mxu0 %v21_v16 }
  0x22   :  { %178 = vmatmul.mubr.f32.vlgmr.msra.gmra.mxu0 %v20_v17 }
  0xe2   :  { %v179_v18 = vpop.f32.mrf.mxu0 }
  0xe3   :  { %122 = vst [vmem:[%s257_s2 + $0x8] sm:$0xff] %v179_v18 }
  0xe4   :  { %v103_v19 = vpop.f32.mrf.mxu0 }
  0xe5   :  { %121 = vst [vmem:[%s257_s2] sm:$0xff] %v103_v19 }

</bundles_post_ra>
